<compile_context>
chip_gen: v7x
topology: tpu7x:2x2x1
jax: 0.10.0
libtpu: 0.0.40
codegen_flags: <defaults>
</compile_context>

<pallas_src>
import functools

import jax
import jax.numpy as jnp
from jax.experimental import pallas as pl
from jax.experimental.pallas import tpu as pltpu

WINDOW = 11  # attention window width used by MyDecoder.forward


def _window_start(ci, tl):
    """Traced equivalent of the Python branching in MyDecoder.forward."""
    return jnp.where(ci <= 5, ci, jnp.where(tl - ci <= 5, ci - 10, ci - 5))


# ---------------------------------------------------------------------------
# shared per-step math (traced inside both kernels)
#   scores : raw (1, seq) attention scores  (h-dependent part only)
#   gx_row : precomputed x-gate contribution  x_t @ Wih_x + (b_ih + b_hh)
# ---------------------------------------------------------------------------
def _attn_lstm_core(enc, h, c, scores, gx_row, start,
                    wihc_t, whh_t, wlin_t, blin, *, hidden1, window):
    seq = enc.shape[0]
    lane = jax.lax.broadcasted_iota(jnp.int32, (1, seq), 1)

    # ---- window-masked softmax (lane-dense) --------------------------------
    in_win = (lane >= start) & (lane < start + window)
    scores = jnp.where(in_win, scores, jnp.float32(-1e30))
    m = jnp.max(scores, axis=-1, keepdims=True)
    e = jnp.where(in_win, jnp.exp(scores - m), jnp.float32(0.0))
    denom = jnp.sum(e, axis=-1, keepdims=True)
    attn_w = e * pl.reciprocal(denom, approx=False)                      # EUP slot
    context = jnp.dot(attn_w, enc, preferred_element_type=jnp.float32)   # (1, H0)

    # ---- LSTM cell (x-gate part precomputed; h@Whh independent of attn) ----
    gates = (gx_row
             + jnp.dot(h, whh_t, preferred_element_type=jnp.float32)
             + jnp.dot(context, wihc_t, preferred_element_type=jnp.float32))
    H1 = hidden1
    i_g = jax.nn.sigmoid(gates[:, 0 * H1:1 * H1])
    f_g = jax.nn.sigmoid(gates[:, 1 * H1:2 * H1])
    g_g = jnp.tanh(gates[:, 2 * H1:3 * H1])
    o_g = jax.nn.sigmoid(gates[:, 3 * H1:4 * H1])
    c_new = f_g * c + i_g * g_g
    h_new = o_g * jnp.tanh(c_new)

    out = jnp.dot(h_new, wlin_t, preferred_element_type=jnp.float32) + blin
    return out, h_new, c_new


# ---------------------------------------------------------------------------
# single-step kernel (mirrors MyDecoder.forward; one compilation serves every
# current_index / target_length via SMEM scalars)
# ---------------------------------------------------------------------------
def _decoder_step_kernel(idx_ref, enc_ref, h_ref, c_ref,
                         wa_ref, wihx_ref, wihc_ref, whh_ref, b_ref,
                         wlin_ref, blin_ref, out_ref,
                         *, hidden1, hidden2, window, pad):
    enc = enc_ref[...]
    h = h_ref[...]
    c = c_ref[...]
    start = idx_ref[0]
    ci = idx_ref[1]
    seq = enc.shape[0]
    lane = jax.lax.broadcasted_iota(jnp.int32, (1, seq), 1)

    # raw attention scores: (h @ Wa) @ enc^T  -> (1, seq)
    q = jnp.dot(h, wa_ref[...], preferred_element_type=jnp.float32)      # (1, H0)
    scores = jax.lax.dot_general(q, enc, (((1,), (1,)), ((), ())),
                                 preferred_element_type=jnp.float32)     # (1, seq)

    # encoder row at current_index via one-hot matmul (no dyn slice), then
    # its gate contribution (pre-summed LSTM biases folded in).
    onehot = (lane == ci).astype(jnp.float32)                            # (1, seq)
    x_enc = jnp.dot(onehot, enc, preferred_element_type=jnp.float32)     # (1, H0)
    gx_row = (jnp.dot(x_enc, wihx_ref[...], preferred_element_type=jnp.float32)
              + b_ref[...])                                              # (1, 4H1)

    out, h_new, c_new = _attn_lstm_core(
        enc, h, c, scores, gx_row, start,
        wihc_ref[...], whh_ref[...], wlin_ref[...], blin_ref[...],
        hidden1=hidden1, window=window)

    pieces = [out, h_new, c_new]
    if pad:
        pieces.append(jnp.zeros((1, pad), jnp.float32))
    out_ref[...] = jnp.concatenate(pieces, axis=-1)    # one lane-dense store


# ---------------------------------------------------------------------------
# fused decode-loop kernel: ONE invocation (no grid), in-kernel unrolled loop,
# h/c carried in vregs, lane-dense (T, 128) resident output.
# ---------------------------------------------------------------------------
def _decoder_fused_kernel(enc_ref, enc_wa_ref, gx_ref, h0_ref, c0_ref,
                          wihc_ref, whh_ref, wlin_ref, blin_ref, out_ref,
                          *, hidden1, hidden2, window, tlen, pad):
    enc = enc_ref[...]
    enc_wa = enc_wa_ref[...]
    wihc = wihc_ref[...]
    whh = whh_ref[...]
    wlin = wlin_ref[...]
    blin = blin_ref[...]
    zpad = jnp.zeros((1, pad), jnp.float32) if pad else None   # hoisted out of loop

    def body(t, carry):
        h, c = carry
        start = _window_start(t, tlen)
        # h-dependent attention scores: one MXU op (enc_wa precomputed)
        scores = jnp.dot(h, enc_wa, preferred_element_type=jnp.float32)  # (1, seq)
        # x-gate contribution of step t: dynamic sublane read (precomputed table)
        gx_row = gx_ref[pl.ds(t, 1), :]                                  # (1, 4H1)
        out, h_new, c_new = _attn_lstm_core(
            enc, h, c, scores, gx_row, start,
            wihc, whh, wlin, blin, hidden1=hidden1, window=window)
        pieces = [out, h_new, c_new] + ([zpad] if pad else [])
        out_ref[pl.ds(t, 1), :] = jnp.concatenate(pieces, axis=-1)       # one row store
        return h_new, c_new

    jax.lax.fori_loop(0, tlen, body, (h0_ref[...], c0_ref[...]), unroll=True)


# ---------------------------------------------------------------------------
# parameter init: weights stored pre-transposed / pre-packed ONCE
# ---------------------------------------------------------------------------
def init_params(key, hidden_dim):
    H0, H1, H2 = hidden_dim
    ks = jax.random.split(key, 8)
    s = 0.1
    wa = jax.random.normal(ks[0], (H1, H0), jnp.float32) * s      # attn Linear(H0->H1)
    ba = jax.random.normal(ks[1], (H1,), jnp.float32) * s
    wih = jax.random.normal(ks[2], (4 * H1, 2 * H0), jnp.float32) * s
    bih = jax.random.normal(ks[3], (4 * H1,), jnp.float32) * s
    whh = jax.random.normal(ks[4], (4 * H1, H1), jnp.float32) * s
    bhh = jax.random.normal(ks[5], (4 * H1,), jnp.float32) * s
    wlin = jax.random.normal(ks[6], (H2, H1), jnp.float32) * s
    blin = jax.random.normal(ks[7], (H2,), jnp.float32) * s

    wih_t = wih.T                                                 # (2H0, 4H1)
    return dict(
        wa=wa,                           # (H1,H0) used as h @ wa -> (1,H0)
        ba=ba[None, :],                  # (1,H1)  (reference only; softmax-invariant)
        wih_x_t=wih_t[:H0, :],           # (H0,4H1)  input part
        wih_c_t=wih_t[H0:, :],           # (H0,4H1)  context part
        whh_t=whh.T,                     # (H1,4H1)
        b_lstm=(bih + bhh)[None, :],     # (1,4H1)   pre-summed LSTM biases
        wlin_t=wlin.T,                   # (H1,H2)
        blin=blin[None, :],              # (1,H2)
    )


def _padded_width(hidden_dim):
    _, H1, H2 = hidden_dim
    W = H2 + 2 * H1
    Wp = max(128, ((W + 127) // 128) * 128)   # lane-dense packed row
    return W, Wp, Wp - W


# ---------------------------------------------------------------------------
# wrappers
# ---------------------------------------------------------------------------
def my_decoder_forward(params, hidden_dim, last_hidden, last_state,
                       encoder_outputs, current_index, target_length):
    """Single decode step (mirrors MyDecoder.forward). current_index may be traced."""
    H0, H1, H2 = hidden_dim
    seq = encoder_outputs.shape[1]
    enc = encoder_outputs.reshape(seq, H0)
    h = last_hidden.reshape(1, H1)
    c = last_state.reshape(1, H1)

    ci = jnp.asarray(current_index, jnp.int32)
    tl = jnp.asarray(target_length, jnp.int32)
    idx = jnp.stack([_window_start(ci, tl), ci]).astype(jnp.int32)   # (2,) -> SMEM

    W, Wp, pad = _padded_width(hidden_dim)
    vmem = functools.partial(pl.BlockSpec, memory_space=pltpu.MemorySpace.VMEM)
    smem = functools.partial(pl.BlockSpec, memory_space=pltpu.MemorySpace.SMEM)

    packed = pl.pallas_call(
        functools.partial(_decoder_step_kernel,
                          hidden1=H1, hidden2=H2, window=WINDOW, pad=pad),
        out_shape=jax.ShapeDtypeStruct((1, Wp), jnp.float32),
        in_specs=[smem()] + [vmem()] * 10,
        out_specs=vmem(),
    )(idx, enc, h, c,
      params["wa"], params["wih_x_t"], params["wih_c_t"],
      params["whh_t"], params["b_lstm"], params["wlin_t"], params["blin"])

    out = packed[:, :H2]
    h_new = packed[:, H2:H2 + H1]
    c_new = packed[:, H2 + H1:W]
    return [out, h_new.reshape(1, 1, H1), c_new.reshape(1, 1, H1)]


def my_decoder_decode_fused(params, hidden_dim, last_hidden, last_state,
                            encoder_outputs, target_length):
    """Whole decode loop in ONE pallas_call invocation (in-kernel unrolled loop)."""
    H0, H1, H2 = hidden_dim
    seq = encoder_outputs.shape[1]
    T = int(target_length)   # decode length == target_length used for the window logic
    enc = encoder_outputs.reshape(seq, H0)
    h0 = last_hidden.reshape(1, H1)
    c0 = last_state.reshape(1, H1)

    # h-independent precomputes, done ONCE for the whole decode loop:
    enc_wa = jnp.dot(params["wa"], enc.T)                         # (H1, seq)
    gx_all = jnp.dot(enc, params["wih_x_t"]) + params["b_lstm"]   # (seq, 4H1)

    W, Wp, pad = _padded_width(hidden_dim)
    vmem = functools.partial(pl.BlockSpec, memory_space=pltpu.MemorySpace.VMEM)

    outs = pl.pallas_call(
        functools.partial(_decoder_fused_kernel, hidden1=H1, hidden2=H2,
                          window=WINDOW, tlen=T, pad=pad),
        out_shape=jax.ShapeDtypeStruct((T, Wp), jnp.float32),
        in_specs=[vmem()] * 9,
        out_specs=vmem(),
    )(enc, enc_wa, gx_all, h0, c0,
      params["wih_c_t"], params["whh_t"], params["wlin_t"], params["blin"])

    outputs = outs[:, :H2]
    h_final = outs[-1:, H2:H2 + H1]
    c_final = outs[-1:, H2 + H1:W]
    return outputs, h_final.reshape(1, 1, H1), c_final.reshape(1, 1, H1)


# ---------------------------------------------------------------------------
# pure-JAX reference (mirrors the PyTorch math) for sanity checks
# ---------------------------------------------------------------------------
def _reference_step(params, hidden_dim, h, c, enc, current_index, target_length):
    H0, H1, H2 = hidden_dim
    ci, tl = int(current_index), int(target_length)
    if ci <= 5:
        start = ci
    elif tl - ci <= 5:
        start = ci - 10
    else:
        start = ci - 5
    frac = enc[start:start + WINDOW, :]                       # (11,H0)
    energy = frac @ params["wa"].T + params["ba"]             # (11,H1)
    scores = jnp.sum(energy * h, axis=-1)                     # (11,)
    w = jax.nn.softmax(scores)[None, :]                       # (1,11)
    context = w @ frac                                        # (1,H0)
    x = jnp.concatenate([enc[ci][None, :], context], axis=1)  # (1,2H0)
    wih_t = jnp.concatenate([params["wih_x_t"], params["wih_c_t"]], axis=0)
    gates = x @ wih_t + h @ params["whh_t"] + params["b_lstm"]
    i_g = jax.nn.sigmoid(gates[:, 0 * H1:1 * H1])
    f_g = jax.nn.sigmoid(gates[:, 1 * H1:2 * H1])
    g_g = jnp.tanh(gates[:, 2 * H1:3 * H1])
    o_g = jax.nn.sigmoid(gates[:, 3 * H1:4 * H1])
    c_new = f_g * c + i_g * g_g
    h_new = o_g * jnp.tanh(c_new)
    out = h_new @ params["wlin_t"] + params["blin"]
    return out, h_new, c_new


if __name__ == "__main__":
    hidden_dim = [32, 32, 32]       # [H_enc, H_lstm, H_out]
    H0, H1, H2 = hidden_dim
    seq_len = 24

    key = jax.random.PRNGKey(0)
    kp, ke, kh, kc = jax.random.split(key, 4)
    params = init_params(kp, hidden_dim)

    encoder_outputs = jax.random.normal(ke, (1, seq_len, H0), jnp.float32)
    last_hidden = jax.random.normal(kh, (1, 1, H1), jnp.float32) * 0.1
    last_state = jax.random.normal(kc, (1, 1, H1), jnp.float32) * 0.1
    enc2d = encoder_outputs.reshape(seq_len, H0)
    h0 = last_hidden.reshape(1, H1)
    c0 = last_state.reshape(1, H1)

    # ---- single-step kernel (one compilation serves every current_index) ----
    @jax.jit
    def step_fn(h, c, ci):
        return my_decoder_forward(params, hidden_dim, h, c,
                                  encoder_outputs, ci, seq_len)

    for ci in (3, 10, 21):  # hits all three window branches
        out, h_new, c_new = step_fn(last_hidden, last_state, jnp.int32(ci))
        jax.block_until_ready((out, h_new, c_new))
        r_out, r_h, r_c = _reference_step(params, hidden_dim, h0, c0,
                                          enc2d, ci, seq_len)
        assert jnp.allclose(out, r_out, atol=5e-3, rtol=5e-3)
        assert jnp.allclose(h_new.reshape(1, H1), r_h, atol=5e-3, rtol=5e-3)
        assert jnp.allclose(c_new.reshape(1, H1), r_c, atol=5e-3, rtol=5e-3)

    # ---- fused decode loop: ONE pallas_call invocation for all steps --------
    @jax.jit
    def decode_fn(h, c):
        return my_decoder_decode_fused(params, hidden_dim, h, c,
                                       encoder_outputs, seq_len)

    outs, h_f, c_f = decode_fn(last_hidden, last_state)
    jax.block_until_ready((outs, h_f, c_f))

    h_r, c_r = h0, c0
    ref_rows = []
    for t in range(seq_len):
        o_r, h_r, c_r = _reference_step(params, hidden_dim, h_r, c_r,
                                        enc2d, t, seq_len)
        ref_rows.append(o_r)
    ref_outs = jnp.concatenate(ref_rows, axis=0)
    assert jnp.allclose(outs, ref_outs, atol=1e-2, rtol=1e-2)
    assert jnp.allclose(h_f.reshape(1, H1), h_r, atol=1e-2, rtol=1e-2)
    assert jnp.allclose(c_f.reshape(1, H1), c_r, atol=1e-2, rtol=1e-2)

    # TODO(synk): the original Attn('general', ...) class is not in the spec;
    # Luong 'general' attention (and PyTorch i,f,g,o LSTM gate order) is assumed.
    print("KERNEL_OK")
</pallas_src>

<mosaic_0001>
module attributes {stable_mosaic.version = 11 : i64} {
  func.func @_decoder_step_kernel(%arg0: memref<2xi32, #tpu.memory_space<smem>>, %arg1: memref<24x32xf32, #tpu.memory_space<vmem>>, %arg2: memref<1x32xf32, #tpu.memory_space<vmem>>, %arg3: memref<1x32xf32, #tpu.memory_space<vmem>>, %arg4: memref<32x32xf32, #tpu.memory_space<vmem>>, %arg5: memref<32x128xf32, #tpu.memory_space<vmem>>, %arg6: memref<32x128xf32, #tpu.memory_space<vmem>>, %arg7: memref<32x128xf32, #tpu.memory_space<vmem>>, %arg8: memref<1x128xf32, #tpu.memory_space<vmem>>, %arg9: memref<32x32xf32, #tpu.memory_space<vmem>>, %arg10: memref<1x32xf32, #tpu.memory_space<vmem>>, %arg11: memref<1x128xf32, #tpu.memory_space<vmem>>) attributes {dimension_semantics = [], scalar_prefetch = 0 : i64, scratch_operands = 0 : i64, tpu.core_type = #tpu.core_type<tc>} {
    %c0 = arith.constant 0 : index
    %c0_0 = arith.constant 0 : index
    %0 = vector.load %arg1[%c0, %c0_0] : memref<24x32xf32, #tpu.memory_space<vmem>>, vector<24x32xf32>
    %c0_1 = arith.constant 0 : index
    %c0_2 = arith.constant 0 : index
    %1 = vector.load %arg2[%c0_1, %c0_2] : memref<1x32xf32, #tpu.memory_space<vmem>>, vector<1x32xf32>
    %c0_3 = arith.constant 0 : index
    %c0_4 = arith.constant 0 : index
    %2 = vector.load %arg3[%c0_3, %c0_4] : memref<1x32xf32, #tpu.memory_space<vmem>>, vector<1x32xf32>
    %c0_5 = arith.constant 0 : index
    %3 = memref.load %arg0[%c0_5] : memref<2xi32, #tpu.memory_space<smem>>
    %c1 = arith.constant 1 : index
    %4 = memref.load %arg0[%c1] : memref<2xi32, #tpu.memory_space<smem>>
    %5 = tpu.iota {dimensions = array<i32: 1>} : vector<1x24xi32>
    %c0_6 = arith.constant 0 : index
    %c0_7 = arith.constant 0 : index
    %6 = vector.load %arg4[%c0_6, %c0_7] : memref<32x32xf32, #tpu.memory_space<vmem>>, vector<32x32xf32>
    %cst = arith.constant dense<0.000000e+00> : vector<1x32xf32>
    %7 = tpu.matmul %1, %6, %cst {dimension_numbers = #tpu.dot_dimension_numbers<[1], [0], [0], [1], [0, 0, 1, 1], [], []>} : vector<1x32xf32>, vector<32x32xf32>, vector<1x32xf32> -> vector<1x32xf32>
    %cst_8 = arith.constant dense<0.000000e+00> : vector<1x24xf32>
    %8 = tpu.matmul %7, %0, %cst_8 {dimension_numbers = #tpu.dot_dimension_numbers<[1], [1], [0], [0], [0, 0, 1, 0], [], []>} : vector<1x32xf32>, vector<24x32xf32>, vector<1x24xf32> -> vector<1x24xf32>
    %9 = vector.broadcast %4 : i32 to vector<1x24xi32>
    %10 = arith.cmpi eq, %5, %9 : vector<1x24xi32>
    %11 = arith.extui %10 : vector<1x24xi1> to vector<1x24xi32>
    %12 = arith.sitofp %11 : vector<1x24xi32> to vector<1x24xf32>
    %cst_9 = arith.constant dense<0.000000e+00> : vector<1x32xf32>
    %13 = tpu.matmul %12, %0, %cst_9 {dimension_numbers = #tpu.dot_dimension_numbers<[1], [0], [0], [1], [0, 0, 1, 1], [], []>} : vector<1x24xf32>, vector<24x32xf32>, vector<1x32xf32> -> vector<1x32xf32>
    %c0_10 = arith.constant 0 : index
    %c0_11 = arith.constant 0 : index
    %14 = vector.load %arg5[%c0_10, %c0_11] : memref<32x128xf32, #tpu.memory_space<vmem>>, vector<32x128xf32>
    %cst_12 = arith.constant dense<0.000000e+00> : vector<1x128xf32>
    %15 = tpu.matmul %13, %14, %cst_12 {dimension_numbers = #tpu.dot_dimension_numbers<[1], [0], [0], [1], [0, 0, 1, 1], [], []>} : vector<1x32xf32>, vector<32x128xf32>, vector<1x128xf32> -> vector<1x128xf32>
    %c0_13 = arith.constant 0 : index
    %c0_14 = arith.constant 0 : index
    %16 = vector.load %arg8[%c0_13, %c0_14] : memref<1x128xf32, #tpu.memory_space<vmem>>, vector<1x128xf32>
    %17 = arith.addf %15, %16 : vector<1x128xf32>
    %c0_15 = arith.constant 0 : index
    %c0_16 = arith.constant 0 : index
    %18 = vector.load %arg6[%c0_15, %c0_16] : memref<32x128xf32, #tpu.memory_space<vmem>>, vector<32x128xf32>
    %c0_17 = arith.constant 0 : index
    %c0_18 = arith.constant 0 : index
    %19 = vector.load %arg7[%c0_17, %c0_18] : memref<32x128xf32, #tpu.memory_space<vmem>>, vector<32x128xf32>
    %c0_19 = arith.constant 0 : index
    %c0_20 = arith.constant 0 : index
    %20 = vector.load %arg9[%c0_19, %c0_20] : memref<32x32xf32, #tpu.memory_space<vmem>>, vector<32x32xf32>
    %c0_21 = arith.constant 0 : index
    %c0_22 = arith.constant 0 : index
    %21 = vector.load %arg10[%c0_21, %c0_22] : memref<1x32xf32, #tpu.memory_space<vmem>>, vector<1x32xf32>
    %22 = tpu.iota {dimensions = array<i32: 1>} : vector<1x24xi32>
    %23 = vector.broadcast %3 : i32 to vector<1x24xi32>
    %24 = arith.cmpi sge, %22, %23 : vector<1x24xi32>
    %c11_i32 = arith.constant 11 : i32
    %25 = arith.addi %3, %c11_i32 : i32
    %26 = vector.broadcast %25 : i32 to vector<1x24xi32>
    %27 = arith.cmpi slt, %22, %26 : vector<1x24xi32>
    %28 = arith.andi %24, %27 : vector<1x24xi1>
    %cst_23 = arith.constant -1.000000e+30 : f32
    %29 = vector.broadcast %cst_23 : f32 to vector<1x24xf32>
    %30 = arith.select %28, %8, %29 : vector<1x24xi1>, vector<1x24xf32>
    %cst_24 = arith.constant dense<0xFF800000> : vector<1xf32>
    %31 = vector.multi_reduction <maximumf>, %30, %cst_24 [1] : vector<1x24xf32> to vector<1xf32>
    %32 = vector.shape_cast %31 : vector<1xf32> to vector<1x1xf32>
    %33 = vector.broadcast %32 : vector<1x1xf32> to vector<1x24xf32>
    %34 = arith.subf %30, %33 : vector<1x24xf32>
    %35 = math.exp %34 : vector<1x24xf32>
    %cst_25 = arith.constant 0.000000e+00 : f32
    %36 = vector.broadcast %cst_25 : f32 to vector<1x24xf32>
    %37 = arith.select %28, %35, %36 : vector<1x24xi1>, vector<1x24xf32>
    %cst_26 = arith.constant dense<0.000000e+00> : vector<1xf32>
    %38 = vector.multi_reduction <add>, %37, %cst_26 [1] : vector<1x24xf32> to vector<1xf32>
    %39 = vector.shape_cast %38 : vector<1xf32> to vector<1x1xf32>
    %40 = tpu.reciprocal %39 : vector<1x1xf32> -> vector<1x1xf32>
    %41 = vector.broadcast %40 : vector<1x1xf32> to vector<1x24xf32>
    %42 = arith.mulf %37, %41 : vector<1x24xf32>
    %cst_27 = arith.constant dense<0.000000e+00> : vector<1x32xf32>
    %43 = tpu.matmul %42, %0, %cst_27 {dimension_numbers = #tpu.dot_dimension_numbers<[1], [0], [0], [1], [0, 0, 1, 1], [], []>} : vector<1x24xf32>, vector<24x32xf32>, vector<1x32xf32> -> vector<1x32xf32>
    %cst_28 = arith.constant dense<0.000000e+00> : vector<1x128xf32>
    %44 = tpu.matmul %1, %19, %cst_28 {dimension_numbers = #tpu.dot_dimension_numbers<[1], [0], [0], [1], [0, 0, 1, 1], [], []>} : vector<1x32xf32>, vector<32x128xf32>, vector<1x128xf32> -> vector<1x128xf32>
    %45 = arith.addf %17, %44 : vector<1x128xf32>
    %cst_29 = arith.constant dense<0.000000e+00> : vector<1x128xf32>
    %46 = tpu.matmul %43, %18, %cst_29 {dimension_numbers = #tpu.dot_dimension_numbers<[1], [0], [0], [1], [0, 0, 1, 1], [], []>} : vector<1x32xf32>, vector<32x128xf32>, vector<1x128xf32> -> vector<1x128xf32>
    %47 = arith.addf %45, %46 : vector<1x128xf32>
    %48 = vector.extract_strided_slice %47 {offsets = [0, 0], sizes = [1, 32], strides = [1, 1]} : vector<1x128xf32> to vector<1x32xf32>
    %49 = arith.negf %48 : vector<1x32xf32>
    %50 = math.exp %49 : vector<1x32xf32>
    %cst_30 = arith.constant 1.000000e+00 : f32
    %51 = vector.broadcast %cst_30 : f32 to vector<1x32xf32>
    %52 = arith.addf %51, %50 : vector<1x32xf32>
    %53 = arith.divf %51, %52 : vector<1x32xf32>
    %54 = vector.extract_strided_slice %47 {offsets = [0, 32], sizes = [1, 32], strides = [1, 1]} : vector<1x128xf32> to vector<1x32xf32>
    %55 = arith.negf %54 : vector<1x32xf32>
    %56 = math.exp %55 : vector<1x32xf32>
    %cst_31 = arith.constant 1.000000e+00 : f32
    %57 = vector.broadcast %cst_31 : f32 to vector<1x32xf32>
    %58 = arith.addf %57, %56 : vector<1x32xf32>
    %59 = arith.divf %57, %58 : vector<1x32xf32>
    %60 = vector.extract_strided_slice %47 {offsets = [0, 64], sizes = [1, 32], strides = [1, 1]} : vector<1x128xf32> to vector<1x32xf32>
    %61 = math.tanh %60 : vector<1x32xf32>
    %62 = vector.extract_strided_slice %47 {offsets = [0, 96], sizes = [1, 32], strides = [1, 1]} : vector<1x128xf32> to vector<1x32xf32>
    %63 = arith.negf %62 : vector<1x32xf32>
    %64 = math.exp %63 : vector<1x32xf32>
    %cst_32 = arith.constant 1.000000e+00 : f32
    %65 = vector.broadcast %cst_32 : f32 to vector<1x32xf32>
    %66 = arith.addf %65, %64 : vector<1x32xf32>
    %67 = arith.divf %65, %66 : vector<1x32xf32>
    %68 = arith.mulf %59, %2 : vector<1x32xf32>
    %69 = arith.mulf %53, %61 : vector<1x32xf32>
    %70 = arith.addf %68, %69 : vector<1x32xf32>
    %71 = math.tanh %70 : vector<1x32xf32>
    %72 = arith.mulf %67, %71 : vector<1x32xf32>
    %cst_33 = arith.constant dense<0.000000e+00> : vector<1x32xf32>
    %73 = tpu.matmul %72, %20, %cst_33 {dimension_numbers = #tpu.dot_dimension_numbers<[1], [0], [0], [1], [0, 0, 1, 1], [], []>} : vector<1x32xf32>, vector<32x32xf32>, vector<1x32xf32> -> vector<1x32xf32>
    %74 = arith.addf %73, %21 : vector<1x32xf32>
    %cst_34 = arith.constant 0.000000e+00 : f32
    %75 = vector.broadcast %cst_34 : f32 to vector<1x32xf32>
    %76 = tpu.concatenate %74, %72, %70, %75 in 1 : vector<1x32xf32>, vector<1x32xf32>, vector<1x32xf32>, vector<1x32xf32> -> vector<1x128xf32>
    %c0_35 = arith.constant 0 : index
    %c0_36 = arith.constant 0 : index
    %77 = vector.load %arg11[%c0_35, %c0_36] : memref<1x128xf32, #tpu.memory_space<vmem>>, vector<1x128xf32>
    tpu.vector_store %arg11[%c0_35, %c0_36], %76 {strides = array<i32>} : memref<1x128xf32, #tpu.memory_space<vmem>>, vector<1x128xf32>,
    return
  }
}

</mosaic_0001>

<bundles_post_ra>
// kernel: step_fn.1
= control target key start
LH: loop header
LB: loop body
LE: loop exit
PB: predicated region body
PF: predicated region fallthrough
CT: control target
= control target key end

     0   :  { %16 = vsyncpa [#allocation4], 0  ;;  %s1497_s0 = inlined_call_operand.vmem [shape: s32[2], index: 0, kind: input, shape index: {}]   ;;  %s1498_s1 = inlined_call_operand.hbm [shape: f32[24,32], index: 1, kind: input, shape index: {}]   ;;  %s1499_s2 = inlined_call_operand.hbm [shape: f32[1,32], index: 2, kind: input, shape index: {}]   ;;  %s1500_s3 = inlined_call_operand.hbm [shape: f32[1,32], index: 3, kind: input, shape index: {}]   ;;  %s1501_s4 = inlined_call_operand.vmem [shape: f32[32,32], index: 4, kind: input, shape index: {}]   ;;  %s1502_s5 = inlined_call_operand.vmem [shape: f32[32,128], index: 5, kind: input, shape index: {}]   ;;  %s1503_s6 = inlined_call_operand.hbm [shape: f32[32,128], index: 6, kind: input, shape index: {}]   ;;  %s1504_s7 = inlined_call_operand.hbm [shape: f32[32,128], index: 7, kind: input, shape index: {}]   ;;  %s1505_s8 = inlined_call_operand.vmem [shape: f32[1,128], index: 8, kind: input, shape index: {}]   ;;  %s1506_s9 = inlined_call_operand.hbm [shape: f32[32,32], index: 9, kind: input, shape index: {}]   ;;  %s1507_s10 = inlined_call_operand.hbm [shape: f32[1,32], index: 10, kind: input, shape index: {}]   ;;  %s1508_s11 = inlined_call_operand.vmem [shape: f32[1,128], index: 11, kind: output, shape index: {}]  }
   0x1   :  { %17 = vsyncpa [#allocation3], 0 }
   0x2   :  { %18 = vsyncpa [#allocation7], 0 }
   0x3   :  { %19 = vsyncpa [#allocation10], 0 }
   0x4   :  { %20 = vsyncpa [#allocation13], 0  ;;  %s1227_s17 = smov [#allocation6]   ;;  %s1051_s21 = scalar_lea.hbm %s1499_s2, 16 }
   0x5   :  { %s49_s18 = sshll.u32 %s1227_s17, 4  ;;  %p1052_p0 = scmp.ne.s32.totalorder %s1499_s2, %s1051_s21  ;;  %s50_s18 = int_to_ptr.vmem [resolvable:$true] %s49_s18 }
   0x6   :  { %p1055_p1 = scmp.lt.u32.totalorder %s1051_s21, %s1499_s2 }
   0x8   :  { %p1057_p2 = pnand %p1055_p1, %p1052_p0 }
   0xa   :  { %1060 = shalt.err (!%p1057_p2)
}
   0xb   :  { %s1061_s26 = scalar_lea.vmem %s50_s18, 16  ;;  %s1065_s27 = scalar_lea.vmem %s50_s18, 32 }
   0xc   :  { %p1062_p3 = scmp.ne.s32.totalorder %s50_s18, %s1061_s26  ;;  %p1066_p4 = scmp.lt.s32.totalorder %s50_s18, %s50_s18 }
   0xd   :  { %p1067_p5 = scmp.lt.s32.totalorder %s1065_s27, %s1061_s26 }
   0xf   :  { %p1068_p6 = por %p1067_p5, %p1066_p4 }
  0x11   :  { %p1069_p7 = pnand %p1068_p6, %p1062_p3 }
  0x13   :  { %1072 = shalt.err (!%p1069_p7)
}
  0x14   :  { %52 = dma.hbm_to_vmem [thread:$0]  %s1499_s2, 16, %s50_s18, [#allocation7]  }
  0x15   :  { %s1228_s30 = smov [#allocation9]   ;;  %s1229_s13 = smov [#allocation12]  }
  0x16   :  { %s72_s12 = sshll.u32 %s1228_s30, 4  ;;  %s98_s14 = sshll.u32 %s1229_s13, 4  ;;  %s73_s12 = int_to_ptr.vmem [resolvable:$true] %s72_s12  ;;  %s99_s14 = int_to_ptr.vmem [resolvable:$true] %s98_s14 }
  0x17   :  { %s1073_s17 = scalar_lea.hbm %s1503_s6, 512 }
  0x18   :  { %p1074_p8 = scmp.ne.s32.totalorder %s1503_s6, %s1073_s17  ;;  %p1077_p9 = scmp.lt.u32.totalorder %s1073_s17, %s1503_s6 }
  0x1a   :  { %p1079_p10 = pnand %p1077_p9, %p1074_p8 }
  0x1c   :  { %1082 = shalt.err (!%p1079_p10)
}
  0x1d   :  { %s1083_s2 = scalar_lea.vmem %s73_s12, 512  ;;  %p1088_p12 = scmp.lt.s32.totalorder %s73_s12, %s73_s12 }
  0x1e   :  { %p1084_p11 = scmp.ne.s32.totalorder %s73_s12, %s1083_s2  ;;  %p1089_p13 = scmp.lt.s32.totalorder %s1083_s2, %s1083_s2 }
  0x20   :  { %p1090_p0 = por %p1089_p13, %p1088_p12 }
  0x22   :  { %p1091_p1 = pnand %p1090_p0, %p1084_p11 }
  0x24   :  { %1094 = shalt.err (!%p1091_p1)
}
  0x25   :  { %s1230_s18 = smov 128   ;;  %s1231_s23 = smov 8  }
  0x26   :  { %78 = dma.hbm_to_vmem [thread:$0]  %s1503_s6, 512, %s73_s12, [#allocation10], %s1230_s18, %s1230_s18, %s1231_s23  }
  0x27   :  { %s27_s28 = sshll.u32 %s1497_s0, 4  ;;  %s1095_s13 = scalar_lea.hbm %s1506_s9, 512  ;;  %s28_s28 = int_to_ptr.vmem [resolvable:$true] %s27_s28 }
  0x28   :  { %p1096_p2 = scmp.ne.s32.totalorder %s1506_s9, %s1095_s13  ;;  %p1099_p3 = scmp.lt.u32.totalorder %s1095_s13, %s1506_s9 }
  0x2a   :  { %p1101_p4 = pnand %p1099_p3, %p1096_p2 }
  0x2c   :  { %1104 = shalt.err (!%p1101_p4)
}
  0x2d   :  { %s1105_s6 = scalar_lea.vmem %s99_s14, 512  ;;  %p1110_p6 = scmp.lt.s32.totalorder %s99_s14, %s99_s14 }
  0x2e   :  { %p1106_p5 = scmp.ne.s32.totalorder %s99_s14, %s1105_s6  ;;  %p1111_p7 = scmp.lt.s32.totalorder %s1105_s6, %s1105_s6 }
  0x30   :  { %p1112_p8 = por %p1111_p7, %p1110_p6 }
  0x32   :  { %p1113_p9 = pnand %p1112_p8, %p1106_p5 }
  0x34   :  { %1116 = shalt.err (!%p1113_p9)
}
  0x35   :  { %104 = dma.hbm_to_vmem [thread:$0]  %s1506_s9, 512, %s99_s14, [#allocation13], %s1230_s18, %s1230_s18, %s1231_s23  }
  0x36   :  { %s1117_s20 = scalar_lea.vmem %s28_s28, 16  ;;  %p1122_p11 = scmp.lt.s32.totalorder %s28_s28, %s28_s28 }
  0x37   :  { %p1118_p10 = scmp.ne.s32.totalorder %s28_s28, %s1117_s20  ;;  %p1123_p12 = scmp.lt.s32.totalorder %s1117_s20, %s1117_s20 }
  0x39   :  { %p1124_p13 = por %p1123_p12, %p1122_p11 }
  0x3b   :  { %p1125_p0 = pnand %p1124_p13, %p1118_p10 }
  0x3d   :  { %1128 = shalt.err (!%p1125_p0)
}
  0x3e   :  { %s1232_s21 = smov [#allocation2]   ;;  %s1233_s22 = smov [#allocation5]  }
  0x3f   :  { %30 = dma.vmem_to_smem %s28_s28, 16, %s1232_s21, [#allocation4]  }
  0x40   :  { %s36_s2 = sshll.u32 %s1233_s22, 4  ;;  %s1234_s24 = smov [#allocation8]   ;;  %s37_s2 = int_to_ptr.vmem [resolvable:$true] %s36_s2 }
  0x41   :  { %s59_s25 = sshll.u32 %s1234_s24, 4  ;;  %s1129_s9 = scalar_lea.hbm %s1498_s1, 384  ;;  %s60_s25 = int_to_ptr.vmem [resolvable:$true] %s59_s25 }
  0x42   :  { %p1130_p1 = scmp.ne.s32.totalorder %s1498_s1, %s1129_s9  ;;  %p1133_p2 = scmp.lt.u32.totalorder %s1129_s9, %s1498_s1 }
  0x44   :  { %p1135_p3 = pnand %p1133_p2, %p1130_p1 }
  0x46   :  { %1138 = shalt.err (!%p1135_p3)
}
  0x47   :  { %s1139_s28 = scalar_lea.vmem %s37_s2, 384  ;;  %p1144_p5 = scmp.lt.s32.totalorder %s37_s2, %s37_s2 }
  0x48   :  { %p1140_p4 = scmp.ne.s32.totalorder %s37_s2, %s1139_s28  ;;  %p1145_p6 = scmp.lt.s32.totalorder %s1139_s28, %s1139_s28 }
  0x4a   :  { %p1146_p7 = por %p1145_p6, %p1144_p5 }
  0x4c   :  { %p1147_p8 = pnand %p1146_p7, %p1140_p4 }
  0x4e   :  { %1150 = shalt.err (!%p1147_p8)
}
  0x4f   :  { %42 = dma.hbm_to_vmem [thread:$0]  %s1498_s1, 384, %s37_s2, [#allocation3], %s1230_s18, %s1230_s18, %s1231_s23  }
  0x50   :  { %s1151_s6 = scalar_lea.hbm %s1500_s3, 16 }
  0x51   :  { %p1152_p9 = scmp.ne.s32.totalorder %s1500_s3, %s1151_s6  ;;  %p1155_p10 = scmp.lt.u32.totalorder %s1151_s6, %s1500_s3 }
  0x53   :  { %p1157_p11 = pnand %p1155_p10, %p1152_p9 }
  0x55   :  { %1160 = shalt.err (!%p1157_p11)
}
  0x56   :  { %s1161_s22 = scalar_lea.vmem %s60_s25, 16  ;;  %s1165_s24 = scalar_lea.vmem %s60_s25, 32 }
  0x57   :  { %p1162_p12 = scmp.ne.s32.totalorder %s60_s25, %s1161_s22  ;;  %p1166_p13 = scmp.lt.s32.totalorder %s60_s25, %s60_s25 }
  0x58   :  { %p1167_p0 = scmp.lt.s32.totalorder %s1165_s24, %s1161_s22 }
  0x5a   :  { %p1168_p1 = por %p1167_p0, %p1166_p13 }
  0x5c   :  { %p1169_p2 = pnand %p1168_p1, %p1162_p12 }
  0x5e   :  { %1172 = shalt.err (!%p1169_p2)
}
  0x5f   :  { %62 = dma.hbm_to_vmem [thread:$0]  %s1500_s3, 16, %s60_s25, [#allocation7]  }
  0x60   :  { %s1235_s26 = smov [#allocation11]   ;;  %s1236_s9 = smov [#allocation14]  }
  0x61   :  { %s84_s27 = sshll.u32 %s1235_s26, 4  ;;  %s111_s14 = sshll.u32 %s1236_s9, 4  ;;  %s85_s27 = int_to_ptr.vmem [resolvable:$true] %s84_s27  ;;  %s112_s14 = int_to_ptr.vmem [resolvable:$true] %s111_s14 }
  0x62   :  { %s1173_s13 = scalar_lea.hbm %s1504_s7, 512 }
  0x63   :  { %p1174_p3 = scmp.ne.s32.totalorder %s1504_s7, %s1173_s13  ;;  %p1177_p4 = scmp.lt.u32.totalorder %s1173_s13, %s1504_s7 }
  0x65   :  { %p1179_p5 = pnand %p1177_p4, %p1174_p3 }
  0x67   :  { %1182 = shalt.err (!%p1179_p5)
}
  0x68   :  { %s1183_s3 = scalar_lea.vmem %s85_s27, 512  ;;  %p1188_p7 = scmp.lt.s32.totalorder %s85_s27, %s85_s27 }
  0x69   :  { %p1184_p6 = scmp.ne.s32.totalorder %s85_s27, %s1183_s3  ;;  %p1189_p8 = scmp.lt.s32.totalorder %s1183_s3, %s1183_s3 }
  0x6b   :  { %p1190_p9 = por %p1189_p8, %p1188_p7 }
  0x6d   :  { %p1191_p10 = pnand %p1190_p9, %p1184_p6 }
  0x6f   :  { %1194 = shalt.err (!%p1191_p10)
}
  0x70   :  { %90 = dma.hbm_to_vmem [thread:$0]  %s1504_s7, 512, %s85_s27, [#allocation10], %s1230_s18, %s1230_s18, %s1231_s23  }
  0x71   :  { %s1195_s12 = scalar_lea.hbm %s1507_s10, 16 }
  0x72   :  { %p1196_p11 = scmp.ne.s32.totalorder %s1507_s10, %s1195_s12  ;;  %p1199_p12 = scmp.lt.u32.totalorder %s1195_s12, %s1507_s10 }
  0x74   :  { %p1201_p13 = pnand %p1199_p12, %p1196_p11 }
  0x76   :  { %1204 = shalt.err (!%p1201_p13)
}
  0x77   :  { %s1205_s1 = scalar_lea.vmem %s112_s14, 16  ;;  %s1209_s2 = scalar_lea.vmem %s112_s14, 32 }
  0x78   :  { %p1206_p0 = scmp.ne.s32.totalorder %s112_s14, %s1205_s1  ;;  %p1210_p1 = scmp.lt.s32.totalorder %s112_s14, %s112_s14 }
  0x79   :  { %p1211_p2 = scmp.lt.s32.totalorder %s1209_s2, %s1205_s1 }
  0x7b   :  { %p1212_p3 = por %p1211_p2, %p1210_p1 }
  0x7d   :  { %p1213_p4 = pnand %p1212_p3, %p1206_p0 }
  0x7f   :  { %1216 = shalt.err (!%p1213_p4)
}
  0x80   :  { %114 = dma.hbm_to_vmem [thread:$0]  %s1507_s10, 16, %s112_s14, [#allocation13]  }
  0x81   :  { %1217 = dma.done.wait [#allocation4], 16  }
  0x82   :  { %1218 = vsyncadd [#allocation4], 4294967280 }
  0x83   :  { %1219 = dma.done.wait [#allocation3], 384  }
  0x84   :  { %1220 = vsyncadd [#allocation3], 4294966912 }
  0x85   :  { %1221 = dma.done.wait [#allocation7], 32  }
  0x86   :  { %1222 = vsyncadd [#allocation7], 4294967264 }
  0x87   :  { %1223 = dma.done.wait [#allocation10], 1024  }
  0x88   :  { %1224 = vsyncadd [#allocation10], 4294966272 }
  0x89   :  { %1225 = dma.done.wait [#allocation13], 528  }
  0x8a   :  { %1226 = vsyncadd [#allocation13], 4294966768 }
  0x8b   :  { %139 = sfence }
  0x8c   :  { %v149_v0 = vld [vmem:[%s1501_s4] sm:$0xff]  ;;  %v150_v1 = vld [vmem:[%s1501_s4 + $0x8] sm:$0xff]  ;;  %v151_v2 = vld [vmem:[%s1501_s4 + $0x10] sm:$0xff]  ;;  %v1237_v3 = vmov 0.0|0.0   ;;  %vm1238_vm0 = vmmov 0   ;;  %v1239_v6 = vmov 0.0   ;;  %v147_v15 = vlaneseq }
  0x8d   :  { %979 = vmatprep.subr.bf16.mxu0 %v1237_v3  ;;  %v980_v4 = vpack.c.bf16 %v150_v1, %v149_v0  ;;  %v152_v5 = vld [vmem:[%s1501_s4 + $0x18] sm:$0xff]  ;;  %905 = vmatprep.mubr.msk.f32.mxu0 %vm1238_vm0, %v1239_v6  ;;  %vm153_vm1 = vcmask 261120   ;;  %v140_v7 = vld [vmem:[#allocation5] sm:$0xff]  ;;  %v141_v8 = vld [vmem:[#allocation5 + $0x8] sm:$0xff]  ;;  %s145_s4 = sld [smem:[#allocation2]]  ;;  %vm485_vm6 = vcmask 188416  }
  0x8e   :  { %985 = vmatprep.subr.bf16.mxu1 %v1237_v3  ;;  %vm987_vm2 = vmpackc.low %vm153_vm1, %vm153_vm1  ;;  %914 = vmatprep.mubr.msk.f32.mxu1 %vm1238_vm0, %v1239_v6  ;;  %v983_v9 = vpack.c.bf16 %v152_v5, %v151_v2  ;;  %v986_v10 = vpack.c.bf16 %v141_v8, %v140_v7  ;;  %v1423_v11 = vld [vmem:[#allocation6] sm:$0x1]  ;;  %v142_v12 = vld [vmem:[#allocation5 + $0x10] sm:$0xff]  ;;  %v148_v16 = vand.u32 127, %v147_v15  ;;  %s845_s28 = sld [smem:[#allocation2 + $0x1]]  ;;  %vm313_vm7 = vcmask 195584  }
  0x8f   :  { %981 = vmatpush3.bf16.msra.mxu0 %v980_v4  ;;  %v387_v32 = vld [vmem:[%s1502_s5] sm:$0xff]  ;;  %v388_v33 = vld [vmem:[%s1502_s5 + $0x8] sm:$0xff]  ;;  %v389_v34 = vld [vmem:[%s1502_s5 + $0x10] sm:$0xff]  ;;  %s1240_s20 = smov 64   ;;  %s1241_s21 = smov 32   ;;  %vm831_vm9 = vcmask 523264  }
  0x90   :  { %982 = vmatprep.subr.bf16.mxu0 %v1237_v3  ;;  %988 = vmatpush3.bf16.xpose.msk.msra.mxu1 %vm987_vm2, %v986_v10  ;;  %v993_v35 = vpack.c.bf16 %v388_v33, %v387_v32  ;;  %v390_v36 = vld [vmem:[%s1502_s5 + $0x18] sm:$0xff]  ;;  %v470_v39 = vld [vmem:[#allocation11 + $0x8] sm:$0xff]  ;;  %v471_v41 = vld [vmem:[#allocation11 + $0x10] sm:$0xff]  ;;  %vm833_vm10 = vcmask 785408  }
  0x91   :  { %912 = vmatprep.subr.mxu1 %v1239_v6  ;;  %v996_v37 = vpack.c.bf16 %v390_v36, %v389_v34  ;;  %v469_v38 = vld [vmem:[#allocation11] sm:$0xff]  ;;  %v472_v42 = vld [vmem:[#allocation11 + $0x18] sm:$0xff]  ;;  %v466_v47 = vld [vmem:[#allocation9 + $0x8] sm:$0xff] }
  0x92   :  { %v1002_v40 = vpack.c.bf16 %v470_v39, %v469_v38  ;;  %v1005_v45 = vpack.c.bf16 %v472_v42, %v471_v41  ;;  %v465_v46 = vld [vmem:[#allocation9] sm:$0xff]  ;;  %v467_v49 = vld [vmem:[#allocation9 + $0x10] sm:$0xff]  ;;  %v468_v50 = vld [vmem:[#allocation9 + $0x18] sm:$0xff] }
  0x93   :  { %984 = vmatpush3.bf16.msra.mxu0 %v983_v9  ;;  %s480_s13 = sadd.s32 11, %s145_s4  ;;  %v478_v17 = vstv %s145_s4  ;;  %v1008_v48 = vpack.c.bf16 %v466_v47, %v465_v46  ;;  %v1011_v51 = vpack.c.bf16 %v468_v50, %v467_v49  ;;  %v391_v57 = vld [vmem:[%s1505_s8] sm:$0x1]  ;;  %v858_v62 = vld [vmem:[#allocation8] ss:$0 sm:$0xff] }
  0x94   :  { %989 = vmatprep.subr.bf16.mxu0 %v1237_v3  ;;  %v481_v18 = vstv %s480_s13  ;;  %vm479_vm3 = vcmp.ge.s32.totalorder %v148_v16, %v478_v17  ;;  %v309_v24 = vstv %s845_s28 }
  0x95   :  { %vm482_vm4 = vcmp.lt.s32.totalorder %v148_v16, %v481_v18  ;;  %vm310_vm8 = vcmp.eq.s32.totalorder %v148_v16, %v309_v24 }
  0x96   :  { %906 = vmatmul.mubr.msk.f32.vlgmr.msra.gmra.mrb[0].mxu0 %vm153_vm1, %v1423_v11  ;;  %vm1437_vm5 = vmand %vm479_vm3, %vm482_vm4  ;;  %v851_v25 = vsel %vm310_vm8, 1.0, %v1239_v6 }
  0x97   :  { %991 = vmatpush3.bf16.msra.mxu0 %v986_v10  ;;  %923 = vmatprep.mubr.msk.f32.mxu0 %vm1238_vm0, %v1239_v6 }
  0x98   :  { %921 = vmatprep.subr.mxu0 %v1239_v6  ;;  %913 = vmatpush3.xpose.msk.msra.mxu1 %vm153_vm1, %v142_v12 }
  0x99   :  { %992 = vmatprep.subr.bf16.mxu1 %v1237_v3 }
  0x9b   :  { %922 = vmatpush3.msra.mxu0 %v142_v12 }
  0x9c   :  { %998 = vmatprep.subr.bf16.mxu0 %v1237_v3  ;;  %924 = vmatmul.mubr.msk.f32.vlgmr.msra.gmra.mrb[2].mxu0 %vm313_vm7, %v851_v25 }
  0x9d   :  { %1000 = vmatpush3.bf16.msra.mxu0 %v986_v10  ;;  %943 = vmatprep.mubr.msk.f32.mxu0 %vm1238_vm0, %v1239_v6  ;;  %v473_v10 = vld [vmem:[#allocation12] sm:$0xff] }
  0x9e   :  { %941 = vmatprep.subr.mxu0 %v1239_v6 }
  0xa1   :  { %942 = vmatpush3.msra.mxu0 %v142_v12  ;;  %v475_v12 = vld [vmem:[#allocation12 + $0x10] sm:$0xff] }
  0xa2   :  { %1013 = vmatprep.subr.bf16.mxu0 %v1237_v3 }
 0x169   :  { %v223_v13 = vpop.f32.mrb[0].mxu0 }
 0x16a   :  { %v907_v14 = vpop.f32.mrb[1].mxu0  ;;  %915 = vmatmul.mubr.msk.f32.vlgmr.msra.gmra.mrb[0].mxu1 %vm153_vm1, %v223_v13 }
 0x16b   :  { %934 = vmatprep.mubr.msk.f32.mxu1 %vm1238_vm0, %v1239_v6  ;;  %994 = vmatpush3.bf16.msra.mxu1 %v993_v35  ;;  %v476_v14 = vld [vmem:[#allocation12 + $0x18] sm:$0xff] }
 0x16c   :  { %995 = vmatprep.subr.bf16.mxu1 %v1237_v3  ;;  %v1017_v16 = vpack.c.bf16 %v476_v14, %v475_v12 }
 0x16f   :  { %997 = vmatpush3.bf16.msra.mxu1 %v996_v37  ;;  %v383_v43 = vpop.f32.mrb[2].mxu0 }
 0x170   :  { %1001 = vmatprep.subr.bf16.mxu1 %v1237_v3  ;;  %v925_v44 = vpop.f32.mrb[3].mxu0 }
 0x172   :  { %935 = vmatmul.mubr.msk.f32.vlgmr.msra.gmra.mrb[2].mxu1 %vm153_vm1, %v383_v43 }
 0x173   :  { %1003 = vmatpush3.bf16.msra.mxu1 %v1002_v40  ;;  %954 = vmatprep.mubr.msk.f32.mxu1 %vm1238_vm0, %v1239_v6 }
 0x174   :  { %1004 = vmatprep.subr.bf16.mxu1 %v1237_v3 }
 0x177   :  { %1006 = vmatpush3.bf16.msra.mxu1 %v1005_v45 }
 0x178   :  { %1007 = vmatprep.subr.bf16.mxu1 %v1237_v3 }
 0x17a   :  { %955 = vmatmul.mubr.msk.f32.vlgmr.msra.gmra.mrb[2].mxu1 %vm153_vm1, %v1423_v11  ;;  %v474_v11 = vld [vmem:[#allocation12 + $0x8] sm:$0xff] }
 0x17b   :  { %1009 = vmatpush3.bf16.msra.mxu1 %v1008_v48  ;;  %965 = vmatprep.mubr.msk.f32.mxu1 %vm1238_vm0, %v1239_v6  ;;  %v1014_v13 = vpack.c.bf16 %v474_v11, %v473_v10 }
 0x17c   :  { %1010 = vmatprep.subr.bf16.mxu1 %v1237_v3 }
 0x17f   :  { %1012 = vmatpush3.bf16.msra.mxu1 %v1011_v51 }
 0x23d   :  { %v305_v20 = vpop.f32.mrb[0].mxu1 }
 0x23e   :  { %v484_v21 = vsel %vm1437_vm5, %v305_v20, -1e+30  ;;  %v916_v22 = vpop.f32.mrb[1].mxu1 }
 0x23f   :  { %v486_v23 = vsel %vm485_vm6, %v484_v21, -inf }
 0x240   :  { %487 = vmax.xlane.f32.xlu0 %v486_v23 }
 0x2cd   :  { %v488_v26 = vpop.xlane.xlu0 %487 }
 0x2ce   :  { %v489_v27 = vsub.f32 %v484_v21, %v488_v26  ;;  %v477_v21 = vld [vmem:[#allocation14] sm:$0x1] }
 0x2d0   :  { %v490_v28 = vmul.f32 1.442695, %v489_v27 }
 0x2d2   :  { %1039 = vpow2.f32 %v490_v28 }
 0x2dc   :  { %v1040_v29 = vpop.eup %1039 }
 0x2dd   :  { %v492_v30 = vsel %vm1437_vm5, %v1040_v29, 0.0 }
 0x2de   :  { %v493_v31 = vsel %vm485_vm6, %v492_v30, 0.0 }
 0x2df   :  { %494 = vadd.xlane.f32.xlu0 %v493_v31 }
 0x36c   :  { %v495_v52 = vpop.xlane.xlu0 %494 }
 0x36d   :  { %1041 = vrcp.f32 %v495_v52 }
 0x377   :  { %v1042_v53 = vpop.eup %1041 }
 0x378   :  { %v497_v54 = vmul.f32 %v1042_v53, %v492_v30 }
 0x37a   :  { %944 = vmatmul.mubr.msk.f32.vlgmr.msra.gmra.mrb[4].mxu0 %vm313_vm7, %v497_v54 }
 0x37b   :  { %976 = vmatprep.mubr.msk.f32.mxu0 %vm1238_vm0, %v1239_v6  ;;  %1015 = vmatpush3.bf16.msra.mxu0 %v1014_v13 }
 0x37c   :  { %1016 = vmatprep.subr.bf16.mxu0 %v1237_v3 }
 0x37f   :  { %1018 = vmatpush3.bf16.msra.mxu0 %v1017_v16 }
 0x44d   :  { %v567_v55 = vpop.f32.mrb[4].mxu0 }
 0x44e   :  { %v945_v56 = vpop.f32.mrb[5].mxu0  ;;  %966 = vmatmul.mubr.msk.f32.vlgmr.msra.gmra.mrb[2].mxu1 %vm153_vm1, %v567_v55 }
 0x521   :  { %v711_v58 = vpop.f32.mrb[2].mxu1 }
 0x522   :  { %v1019_v59 = vadd.f32 %v711_v58, %v391_v57  ;;  %v967_v60 = vpop.f32.mrb[3].mxu1 }
 0x524   :  { %1043 = vtanh.f32 %v1019_v59  ;;  %v857_v63 = vmul.f32 -1.442695, %v1019_v59 }
 0x526   :  { %1045 = vpow2.f32 %v857_v63 }
 0x52e   :  { %v1044_v61 = vpop.eup %1043 }
 0x52f   :  { %733 = vrot.lane.b32.xlu1 %v1044_v61, %s1240_s20 }
 0x530   :  { %v1046_v0 = vpop.eup %1045 }
 0x531   :  { %v719_v1 = vadd.f32 1.0, %v1046_v0 }
 0x533   :  { %728 = vrot.lane.b32.xlu1 %v858_v62, %s1241_s21  ;;  %1047 = vrcp.f32 %v719_v1 }
 0x53d   :  { %v1048_v2 = vpop.eup %1047 }
 0x5a1   :  { %v734_v4 = vpop.permute.xlu1 %733 }
 0x5a2   :  { %v736_v5 = vmul.f32 %v1048_v2, %v734_v4 }
 0x5a4   :  { %738 = vrot.lane.b32.xlu0 %v736_v5, %s1241_s21 }
 0x5a5   :  { %v729_v6 = vpop.permute.xlu1 %728 }
 0x5a6   :  { %v731_v7 = vmul.f32 %v1048_v2, %v729_v6 }
 0x616   :  { %v739_v8 = vpop.permute.xlu0 %738 }
 0x617   :  { %v741_v9 = vadd.f32 %v739_v8, %v731_v7 }
 0x619   :  { %1049 = vtanh.f32 %v741_v9 }
 0x623   :  { %v1050_v15 = vpop.eup %1049 }
 0x624   :  { %744 = vrot.lane.b32.xlu1 %v1050_v15, %s1240_s20 }
 0x696   :  { %v745_v17 = vpop.permute.xlu1 %744 }
 0x697   :  { %v747_v18 = vmul.f32 %v1048_v2, %v745_v17 }
 0x699   :  { %749 = vrot.lane.b32.xlu1 %v747_v18, %s1241_s21 }
 0x69d   :  { %823 = vrot.lane.b32.xlu1 %v747_v18, %s1240_s20 }
 0x6a1   :  { %827 = vrot.lane.b32.xlu1 %v741_v9, %s1241_s21 }
 0x70b   :  { %v750_v19 = vpop.permute.xlu1 %749 }
 0x70c   :  { %977 = vmatmul.mubr.msk.f32.vlgmr.msra.gmra.mrb[6].mxu0 %vm153_vm1, %v750_v19 }
 0x70f   :  { %v824_v20 = vpop.permute.xlu1 %823 }
 0x713   :  { %v828_v3 = vpop.permute.xlu1 %827 }
 0x7df   :  { %v819_v22 = vpop.f32.mrb[6].mxu0 }
 0x7e0   :  { %v820_v23 = vadd.f32 %v819_v22, %v477_v21  ;;  %v978_v24 = vpop.f32.mrb[7].mxu0 }
 0x7e2   :  { %v830_v25 = vsel %vm153_vm1, %v820_v23, %v824_v20 }
 0x7e3   :  { %v832_v26 = vsel %vm831_vm9, %v830_v25, %v828_v3 }
 0x7e4   :  { %v834_v27 = vsel %vm833_vm10, %v832_v26, 0.0 }
 0x7e5   :  { %835 = vst [vmem:[%s1508_s11] sm:$0x1] %v834_v27 }
 0x7e6   :  { %840 = vsyncpa [#allocation3], 1 }
 0x7e7   :  { %841 = vsyncpa [#allocation7], 1 }
 0x7e8   :  { %842 = vsyncpa [#allocation10], 1 }
 0x7e9   :  { %843 = vsyncpa [#allocation13], 1 }
 0x7ea   :  { %844 = vsyncpa [#allocation4], 1 }

</bundles_post_ra>
